<compile_context>
chip_gen: v7x
topology: tpu7x:2x2x1
jax: 0.10.0
libtpu: 0.0.40
codegen_flags: <defaults>
</compile_context>

<pallas_src>
import functools

import jax
import jax.numpy as jnp
from jax.experimental import pallas as pl
from jax.experimental.pallas import tpu as pltpu

_LANE = 128       # lane width (minimum feature-dim padding)
_SUBLANE = 8      # sublane granularity for the token axis
_MAX_TM = 512     # max rows of tokens per grid step


def _round_up(v, m):
    return (v + m - 1) // m * m


@functools.lru_cache(maxsize=None)
def _tpu_info():
    """(vmem_capacity_bytes, small_mxu). Conservative defaults if query fails."""
    vmem_cap = 64 * 1024 * 1024          # safe for every generation (v7x floor)
    try:
        vmem_cap = int(pltpu.get_tpu_info().vmem_capacity_bytes)
    except Exception:
        pass
    small_mxu = True                      # v5e-and-older style 128-wide MXU
    try:
        kind = jax.devices()[0].device_kind.lower()
        small_mxu = any(t in kind for t in ("v2", "v3", "v4", "v5"))
    except Exception:
        pass
    return vmem_cap, small_mxu


def _pad_feature(d, small_mxu):
    """Pad a feature dim to 128; to 256 on v6e/v7x when the true dim exceeds 128."""
    if small_mxu or d <= _LANE:
        return _round_up(d, _LANE)
    return _round_up(d, 2 * _LANE)


def _feat_tile(d, pref):
    """Largest power-of-two-times-128 tile <= pref that divides padded dim d."""
    t = pref
    while t > _LANE and d % t:
        t //= 2
    return t


# ---------------------------------------------------------------------------
# Fused whole-MLP kernel (weights VMEM-resident, one tile of token rows/step).
# ---------------------------------------------------------------------------
def _mlp_kernel(*refs, num_layers, sigmoid_output):
    """refs = (x_ref, w0, b0, w1, b1, ..., o_ref)."""
    x_ref = refs[0]
    o_ref = refs[1 + 2 * num_layers]

    h = x_ref[...]
    for i in range(num_layers):      # static loop -> fully unrolled, no HBM between layers
        w_ref = refs[1 + 2 * i]
        b_ref = refs[2 + 2 * i]
        h = jnp.dot(h.astype(jnp.bfloat16), w_ref[...],
                    preferred_element_type=jnp.float32) + b_ref[...]
        if i < num_layers - 1:
            h = jnp.maximum(h, 0.0)   # ReLU (VPU)
    if sigmoid_output:
        h = jax.nn.sigmoid(h)         # transcendentals go to the EUP slot
    o_ref[...] = h.astype(o_ref.dtype)


# ---------------------------------------------------------------------------
# Fallback: per-layer tiled matmul (used only when resident weights can't fit).
# ---------------------------------------------------------------------------
def _layer_kernel(x_ref, w_ref, b_ref, o_ref, acc_ref, *, relu, sigmoid):
    @pl.when(pl.program_id(2) == 0)
    def _():
        acc_ref[...] = jnp.zeros_like(acc_ref)

    acc_ref[...] += jnp.dot(x_ref[...].astype(jnp.bfloat16), w_ref[...],
                            preferred_element_type=jnp.float32)

    @pl.when(pl.program_id(2) == pl.num_programs(2) - 1)
    def _():
        h = acc_ref[...] + b_ref[...]
        if relu:
            h = jnp.maximum(h, 0.0)
        if sigmoid:
            h = jax.nn.sigmoid(h)
        o_ref[...] = h.astype(o_ref.dtype)


def _layered_forward(xp, wb, num_layers, sigmoid_output, out_dtype, TM, vmem_budget):
    h = xp
    Mp = h.shape[0]
    for li in range(num_layers):
        w, b = wb[2 * li], wb[2 * li + 1]
        Kp, Np = w.shape
        TN = _feat_tile(Np, 2 * _LANE)
        TK = _feat_tile(Kp, 4 * _LANE)
        relu = li < num_layers - 1
        sig = sigmoid_output and (li == num_layers - 1)
        ldt = jnp.float32 if li < num_layers - 1 else out_dtype
        h = pl.pallas_call(
            functools.partial(_layer_kernel, relu=relu, sigmoid=sig),
            out_shape=jax.ShapeDtypeStruct((Mp, Np), ldt),
            grid=(Mp // TM, Np // TN, Kp // TK),
            in_specs=[
                pl.BlockSpec((TM, TK), lambda i, j, k: (i, k)),
                pl.BlockSpec((TK, TN), lambda i, j, k: (k, j)),
                pl.BlockSpec((1, TN), lambda i, j, k: (0, j)),
            ],
            out_specs=pl.BlockSpec((TM, TN), lambda i, j, k: (i, j)),
            scratch_shapes=[pltpu.VMEM((TM, TN), jnp.float32)],
            compiler_params=pltpu.CompilerParams(
                dimension_semantics=("parallel", "parallel", "arbitrary"),
                vmem_limit_bytes=int(vmem_budget)),
        )(h, w, b)
    return h


# ---------------------------------------------------------------------------
# Parameter packing (one-time): transpose (out,in) -> (in,out), pad, cast bf16.
# ---------------------------------------------------------------------------
def pack_mlp_params(weights, biases):
    num_layers = len(weights)
    _, small_mxu = _tpu_info()
    dims = [weights[0].shape[1]] + [w.shape[0] for w in weights]   # true feature sizes
    pdims = [_pad_feature(d, small_mxu) for d in dims]             # padded feature sizes

    packed = []
    for i in range(num_layers):
        w, b = weights[i], biases[i]
        k_in, k_out = w.shape[1], w.shape[0]
        wt = jnp.zeros((pdims[i], pdims[i + 1]), jnp.bfloat16)
        wt = wt.at[:k_in, :k_out].set(w.T.astype(jnp.bfloat16))     # bf16 weights
        bp = jnp.zeros((1, pdims[i + 1]), jnp.float32).at[0, :k_out].set(b)  # f32 bias
        packed += [wt, bp]
    return {"wb": packed, "dims": dims, "pdims": pdims, "num_layers": num_layers}


# ---------------------------------------------------------------------------
# Forward
# ---------------------------------------------------------------------------
def mlp_forward(x, params, sigmoid_output=False):
    """Fused MLP forward.  x: (..., input_dim)."""
    num_layers = params["num_layers"]
    dims, pdims = params["dims"], params["pdims"]
    wb = params["wb"]

    lead_shape = x.shape[:-1]
    x2d = x.reshape(-1, x.shape[-1])
    M, K0 = x2d.shape
    assert K0 == dims[0]
    out_dim = dims[-1]
    out_dtype = x.dtype

    vmem_cap, _ = _tpu_info()
    budget = int(vmem_cap * 0.85)        # ~108 MiB on v5e/v6e, ~54 MiB on v7x

    w_bytes = sum(a.size * a.dtype.itemsize for a in wb)   # single-buffered residents

    def fused_need(tm):
        x_b = 2 * tm * pdims[0] * x2d.dtype.itemsize            # double-buffered in tile
        o_b = 2 * tm * pdims[-1] * jnp.dtype(out_dtype).itemsize  # double-buffered out tile
        inter = 2 * tm * max(pdims) * 4                          # TWO live f32 intermediates
        return w_bytes + x_b + o_b + inter

    # Token tile: up to _MAX_TM rows, sublane-aligned, and (for larger M) clamped so
    # the grid has >= ~4 steps (keeps both v7x TensorCores busy and pipelined).
    TM = min(_MAX_TM, _round_up(max(M, _SUBLANE), _SUBLANE))
    if M >= 4 * _SUBLANE:
        TM = min(TM, _round_up(-(-M // 4), _SUBLANE))
    # Shrink TM if the fused plan would overshoot the VMEM budget.
    while (fused_need(TM) * 5) // 4 > budget and TM > 64:
        TM = max(64, _round_up(TM // 2, _SUBLANE))
    use_fused = (fused_need(TM) * 5) // 4 <= budget

    if use_fused:
        Mp = _round_up(M, TM)
        if Mp == M and pdims[0] == K0:
            xp = x2d                                           # no extra HBM pad copy
        else:
            xp = jnp.pad(x2d, ((0, Mp - M), (0, pdims[0] - K0)))
        vmem_limit = int(min(budget, max((fused_need(TM) * 5) // 4, 32 * 1024 * 1024)))

        kernel = functools.partial(_mlp_kernel, num_layers=num_layers,
                                   sigmoid_output=sigmoid_output)

        def run(single_buffer_weights):
            in_specs = [pl.BlockSpec((TM, pdims[0]), lambda i: (i, 0))]
            for li in range(num_layers):
                ws = (pdims[li], pdims[li + 1])
                bs = (1, pdims[li + 1])
                if single_buffer_weights:
                    # Constant-index residents: double-buffering is pure VMEM waste.
                    in_specs.append(pl.BlockSpec(ws, lambda i: (0, 0),
                                                 pipeline_mode=pl.Buffered(1)))
                    in_specs.append(pl.BlockSpec(bs, lambda i: (0, 0),
                                                 pipeline_mode=pl.Buffered(1)))
                else:
                    in_specs.append(pl.BlockSpec(ws, lambda i: (0, 0)))
                    in_specs.append(pl.BlockSpec(bs, lambda i: (0, 0)))
            return pl.pallas_call(
                kernel,
                out_shape=jax.ShapeDtypeStruct((Mp, pdims[-1]), out_dtype),
                grid=(Mp // TM,),
                in_specs=in_specs,
                out_specs=pl.BlockSpec((TM, pdims[-1]), lambda i: (i, 0)),
                compiler_params=pltpu.CompilerParams(
                    dimension_semantics=("parallel",),
                    vmem_limit_bytes=vmem_limit),
            )(xp, *wb)

        try:
            out = run(True)
        except Exception:
            # Defensive: retry with default (double) buffering if Buffered(1) is rejected.
            out = run(False)
    else:
        # Resident weights don't fit (very large MLP): per-layer K/N-tiled matmuls.
        TM = 256 if M >= 256 else _round_up(max(M, _SUBLANE), _SUBLANE)
        Mp = _round_up(M, TM)
        if Mp == M and pdims[0] == K0:
            xp = x2d
        else:
            xp = jnp.pad(x2d, ((0, Mp - M), (0, pdims[0] - K0)))
        out = _layered_forward(xp, wb, num_layers, sigmoid_output, out_dtype, TM, budget)

    out = out[:M, :out_dim]
    return out.reshape(*lead_shape, out_dim)


def init_mlp_params(key, input_dim, hidden_dim, output_dim, num_layers):
    """Deterministic init matching nn.Linear layer shapes (PyTorch (out, in) layout)."""
    h = [hidden_dim] * (num_layers - 1)
    in_dims = [input_dim] + h
    out_dims = h + [output_dim]
    weights, biases = [], []
    for n, k in zip(in_dims, out_dims):
        key, kw, kb = jax.random.split(key, 3)
        bound = 1.0 / jnp.sqrt(jnp.float32(n))
        weights.append(jax.random.uniform(kw, (k, n), jnp.float32, -bound, bound))
        biases.append(jax.random.uniform(kb, (k,), jnp.float32, -bound, bound))
    return weights, biases


if __name__ == "__main__":
    # Small shapes: batch=2, seq=8, input_dim=16, hidden_dim=32, output_dim=8
    input_dim, hidden_dim, output_dim, num_layers = 16, 32, 8, 3
    sigmoid_output = True

    key = jax.random.PRNGKey(0)
    key, kx = jax.random.split(key)
    x = jax.random.normal(kx, (2, 8, input_dim), dtype=jnp.float32)

    weights, biases = init_mlp_params(key, input_dim, hidden_dim, output_dim, num_layers)

    # One-time packing (transpose + pad + bf16 cast); reuse across forward calls.
    params = pack_mlp_params(weights, biases)

    out = mlp_forward(x, params, sigmoid_output=sigmoid_output)
    out = jax.block_until_ready(out)

    # Reference check in plain JAX (original f32, unpadded params).
    ref = x.reshape(-1, input_dim)
    for i, (w, b) in enumerate(zip(weights, biases)):
        ref = ref @ w.T + b
        if i < num_layers - 1:
            ref = jnp.maximum(ref, 0.0)
    if sigmoid_output:
        ref = jax.nn.sigmoid(ref)
    ref = ref.reshape(2, 8, output_dim)

    assert out.shape == (2, 8, output_dim), out.shape
    assert out.dtype == x.dtype, out.dtype
    # bf16 weights with f32 accumulation -> relaxed tolerance vs the f32 reference.
    assert jnp.allclose(out, ref, atol=3e-2, rtol=3e-2), float(jnp.max(jnp.abs(out - ref)))
    print("KERNEL_OK")
</pallas_src>

<mosaic_0001>
module attributes {stable_mosaic.version = 11 : i64} {
  func.func @_mlp_kernel(%arg0: i32, %arg1: memref<16x128xf32, #tpu.memory_space<vmem>>, %arg2: memref<128x128xbf16, #tpu.memory_space<vmem>>, %arg3: memref<1x128xf32, #tpu.memory_space<vmem>>, %arg4: memref<128x128xbf16, #tpu.memory_space<vmem>>, %arg5: memref<1x128xf32, #tpu.memory_space<vmem>>, %arg6: memref<128x128xbf16, #tpu.memory_space<vmem>>, %arg7: memref<1x128xf32, #tpu.memory_space<vmem>>, %arg8: memref<16x128xf32, #tpu.memory_space<vmem>>) attributes {dimension_semantics = [#tpu.dimension_semantics<parallel>], iteration_bounds = array<i64: 1>, scalar_prefetch = 0 : i64, scratch_operands = 0 : i64, tpu.core_type = #tpu.core_type<tc>, window_params = [{transform_indices = @transform_0, window_bounds = array<i64: 16, 128>}, {pipeline_mode = #tpu.pipeline_mode<synchronous>, transform_indices = @transform_1, window_bounds = array<i64: 128, 128>}, {pipeline_mode = #tpu.pipeline_mode<synchronous>, transform_indices = @transform_2, window_bounds = array<i64: 1, 128>}, {pipeline_mode = #tpu.pipeline_mode<synchronous>, transform_indices = @transform_3, window_bounds = array<i64: 128, 128>}, {pipeline_mode = #tpu.pipeline_mode<synchronous>, transform_indices = @transform_4, window_bounds = array<i64: 1, 128>}, {pipeline_mode = #tpu.pipeline_mode<synchronous>, transform_indices = @transform_5, window_bounds = array<i64: 128, 128>}, {pipeline_mode = #tpu.pipeline_mode<synchronous>, transform_indices = @transform_6, window_bounds = array<i64: 1, 128>}, {transform_indices = @transform_7, window_bounds = array<i64: 16, 128>}]} {
    %c0 = arith.constant 0 : index
    %c0_0 = arith.constant 0 : index
    %0 = vector.load %arg1[%c0, %c0_0] : memref<16x128xf32, #tpu.memory_space<vmem>>, vector<16x128xf32>
    %1 = arith.truncf %0 : vector<16x128xf32> to vector<16x128xbf16>
    %c0_1 = arith.constant 0 : index
    %c0_2 = arith.constant 0 : index
    %2 = vector.load %arg2[%c0_1, %c0_2] : memref<128x128xbf16, #tpu.memory_space<vmem>>, vector<128x128xbf16>
    %cst = arith.constant dense<0.000000e+00> : vector<16x128xf32>
    %3 = tpu.matmul %1, %2, %cst {dimension_numbers = #tpu.dot_dimension_numbers<[1], [0], [0], [1], [0, 0, 1, 1], [], []>} : vector<16x128xbf16>, vector<128x128xbf16>, vector<16x128xf32> -> vector<16x128xf32>
    %c0_3 = arith.constant 0 : index
    %c0_4 = arith.constant 0 : index
    %4 = vector.load %arg3[%c0_3, %c0_4] : memref<1x128xf32, #tpu.memory_space<vmem>>, vector<1x128xf32>
    %5 = vector.broadcast %4 : vector<1x128xf32> to vector<16x128xf32>
    %6 = arith.addf %3, %5 : vector<16x128xf32>
    %cst_5 = arith.constant 0.000000e+00 : f32
    %7 = vector.broadcast %cst_5 : f32 to vector<16x128xf32>
    %8 = arith.maximumf %6, %7 : vector<16x128xf32>
    %9 = arith.truncf %8 : vector<16x128xf32> to vector<16x128xbf16>
    %c0_6 = arith.constant 0 : index
    %c0_7 = arith.constant 0 : index
    %10 = vector.load %arg4[%c0_6, %c0_7] : memref<128x128xbf16, #tpu.memory_space<vmem>>, vector<128x128xbf16>
    %cst_8 = arith.constant dense<0.000000e+00> : vector<16x128xf32>
    %11 = tpu.matmul %9, %10, %cst_8 {dimension_numbers = #tpu.dot_dimension_numbers<[1], [0], [0], [1], [0, 0, 1, 1], [], []>} : vector<16x128xbf16>, vector<128x128xbf16>, vector<16x128xf32> -> vector<16x128xf32>
    %c0_9 = arith.constant 0 : index
    %c0_10 = arith.constant 0 : index
    %12 = vector.load %arg5[%c0_9, %c0_10] : memref<1x128xf32, #tpu.memory_space<vmem>>, vector<1x128xf32>
    %13 = vector.broadcast %12 : vector<1x128xf32> to vector<16x128xf32>
    %14 = arith.addf %11, %13 : vector<16x128xf32>
    %cst_11 = arith.constant 0.000000e+00 : f32
    %15 = vector.broadcast %cst_11 : f32 to vector<16x128xf32>
    %16 = arith.maximumf %14, %15 : vector<16x128xf32>
    %17 = arith.truncf %16 : vector<16x128xf32> to vector<16x128xbf16>
    %c0_12 = arith.constant 0 : index
    %c0_13 = arith.constant 0 : index
    %18 = vector.load %arg6[%c0_12, %c0_13] : memref<128x128xbf16, #tpu.memory_space<vmem>>, vector<128x128xbf16>
    %cst_14 = arith.constant dense<0.000000e+00> : vector<16x128xf32>
    %19 = tpu.matmul %17, %18, %cst_14 {dimension_numbers = #tpu.dot_dimension_numbers<[1], [0], [0], [1], [0, 0, 1, 1], [], []>} : vector<16x128xbf16>, vector<128x128xbf16>, vector<16x128xf32> -> vector<16x128xf32>
    %c0_15 = arith.constant 0 : index
    %c0_16 = arith.constant 0 : index
    %20 = vector.load %arg7[%c0_15, %c0_16] : memref<1x128xf32, #tpu.memory_space<vmem>>, vector<1x128xf32>
    %21 = vector.broadcast %20 : vector<1x128xf32> to vector<16x128xf32>
    %22 = arith.addf %19, %21 : vector<16x128xf32>
    %23 = arith.negf %22 : vector<16x128xf32>
    %24 = math.exp %23 : vector<16x128xf32>
    %cst_17 = arith.constant 1.000000e+00 : f32
    %25 = vector.broadcast %cst_17 : f32 to vector<16x128xf32>
    %26 = arith.addf %25, %24 : vector<16x128xf32>
    %27 = arith.divf %25, %26 : vector<16x128xf32>
    %c0_18 = arith.constant 0 : index
    %c0_19 = arith.constant 0 : index
    %28 = vector.load %arg8[%c0_18, %c0_19] : memref<16x128xf32, #tpu.memory_space<vmem>>, vector<16x128xf32>
    tpu.vector_store %arg8[%c0_18, %c0_19], %27 {strides = array<i32>} : memref<16x128xf32, #tpu.memory_space<vmem>>, vector<16x128xf32>,
    return
  }
  func.func @transform_0(%arg0: i32) -> (i32, i32) {
    %c0_i32 = arith.constant 0 : i32
    %c0_i32_0 = arith.constant 0 : i32
    return %arg0, %c0_i32 : i32, i32
  }
  func.func @transform_1(%arg0: i32) -> (i32, i32) {
    %c0_i32 = arith.constant 0 : i32
    %c0_i32_0 = arith.constant 0 : i32
    %c0_i32_1 = arith.constant 0 : i32
    return %c0_i32, %c0_i32_0 : i32, i32
  }
  func.func @transform_2(%arg0: i32) -> (i32, i32) {
    %c0_i32 = arith.constant 0 : i32
    %c0_i32_0 = arith.constant 0 : i32
    %c0_i32_1 = arith.constant 0 : i32
    return %c0_i32, %c0_i32_0 : i32, i32
  }
  func.func @transform_3(%arg0: i32) -> (i32, i32) {
    %c0_i32 = arith.constant 0 : i32
    %c0_i32_0 = arith.constant 0 : i32
    %c0_i32_1 = arith.constant 0 : i32
    return %c0_i32, %c0_i32_0 : i32, i32
  }
  func.func @transform_4(%arg0: i32) -> (i32, i32) {
    %c0_i32 = arith.constant 0 : i32
    %c0_i32_0 = arith.constant 0 : i32
    %c0_i32_1 = arith.constant 0 : i32
    return %c0_i32, %c0_i32_0 : i32, i32
  }
  func.func @transform_5(%arg0: i32) -> (i32, i32) {
    %c0_i32 = arith.constant 0 : i32
    %c0_i32_0 = arith.constant 0 : i32
    %c0_i32_1 = arith.constant 0 : i32
    return %c0_i32, %c0_i32_0 : i32, i32
  }
  func.func @transform_6(%arg0: i32) -> (i32, i32) {
    %c0_i32 = arith.constant 0 : i32
    %c0_i32_0 = arith.constant 0 : i32
    %c0_i32_1 = arith.constant 0 : i32
    return %c0_i32, %c0_i32_0 : i32, i32
  }
  func.func @transform_7(%arg0: i32) -> (i32, i32) {
    %c0_i32 = arith.constant 0 : i32
    %c0_i32_0 = arith.constant 0 : i32
    return %arg0, %c0_i32 : i32, i32
  }
}

module attributes {stable_mosaic.version = 11 : i64} {
  func.func @_mlp_kernel(%arg0: i32, %arg1: memref<16x128xf32, #tpu.memory_space<vmem>>, %arg2: memref<128x128xbf16, #tpu.memory_space<vmem>>, %arg3: memref<1x128xf32, #tpu.memory_space<vmem>>, %arg4: memref<128x128xbf16, #tpu.memory_space<vmem>>, %arg5: memref<1x128xf32, #tpu.memory_space<vmem>>, %arg6: memref<128x128xbf16, #tpu.memory_space<vmem>>, %arg7: memref<1x128xf32, #tpu.memory_space<vmem>>, %arg8: memref<16x128xf32, #tpu.memory_space<vmem>>) attributes {dimension_semantics = [#tpu.dimension_semantics<parallel>], iteration_bounds = array<i64: 1>, scalar_prefetch = 0 : i64, scratch_operands = 0 : i64, tpu.core_type = #tpu.core_type<tc>, window_params = [{transform_indices = @transform_0, window_bounds = array<i64: 16, 128>}, {pipeline_mode = #tpu.pipeline_mode<synchronous>, transform_indices = @transform_1, window_bounds = array<i64: 128, 128>}, {pipeline_mode = #tpu.pipeline_mode<synchronous>, transform_indices = @transform_2, window_bounds = array<i64: 1, 128>}, {pipeline_mode = #tpu.pipeline_mode<synchronous>, transform_indices = @transform_3, window_bounds = array<i64: 128, 128>}, {pipeline_mode = #tpu.pipeline_mode<synchronous>, transform_indices = @transform_4, window_bounds = array<i64: 1, 128>}, {pipeline_mode = #tpu.pipeline_mode<synchronous>, transform_indices = @transform_5, window_bounds = array<i64: 128, 128>}, {pipeline_mode = #tpu.pipeline_mode<synchronous>, transform_indices = @transform_6, window_bounds = array<i64: 1, 128>}, {transform_indices = @transform_7, window_bounds = array<i64: 16, 128>}]} {
    %c0 = arith.constant 0 : index
    %c0_0 = arith.constant 0 : index
    %0 = vector.load %arg1[%c0, %c0_0] : memref<16x128xf32, #tpu.memory_space<vmem>>, vector<16x128xf32>
    %1 = arith.truncf %0 : vector<16x128xf32> to vector<16x128xbf16>
    %c0_1 = arith.constant 0 : index
    %c0_2 = arith.constant 0 : index
    %2 = vector.load %arg2[%c0_1, %c0_2] : memref<128x128xbf16, #tpu.memory_space<vmem>>, vector<128x128xbf16>
    %cst = arith.constant dense<0.000000e+00> : vector<16x128xf32>
    %3 = tpu.matmul %1, %2, %cst {dimension_numbers = #tpu.dot_dimension_numbers<[1], [0], [0], [1], [0, 0, 1, 1], [], []>} : vector<16x128xbf16>, vector<128x128xbf16>, vector<16x128xf32> -> vector<16x128xf32>
    %c0_3 = arith.constant 0 : index
    %c0_4 = arith.constant 0 : index
    %4 = vector.load %arg3[%c0_3, %c0_4] : memref<1x128xf32, #tpu.memory_space<vmem>>, vector<1x128xf32>
    %5 = vector.broadcast %4 : vector<1x128xf32> to vector<16x128xf32>
    %6 = arith.addf %3, %5 : vector<16x128xf32>
    %cst_5 = arith.constant 0.000000e+00 : f32
    %7 = vector.broadcast %cst_5 : f32 to vector<16x128xf32>
    %8 = arith.maximumf %6, %7 : vector<16x128xf32>
    %9 = arith.truncf %8 : vector<16x128xf32> to vector<16x128xbf16>
    %c0_6 = arith.constant 0 : index
    %c0_7 = arith.constant 0 : index
    %10 = vector.load %arg4[%c0_6, %c0_7] : memref<128x128xbf16, #tpu.memory_space<vmem>>, vector<128x128xbf16>
    %cst_8 = arith.constant dense<0.000000e+00> : vector<16x128xf32>
    %11 = tpu.matmul %9, %10, %cst_8 {dimension_numbers = #tpu.dot_dimension_numbers<[1], [0], [0], [1], [0, 0, 1, 1], [], []>} : vector<16x128xbf16>, vector<128x128xbf16>, vector<16x128xf32> -> vector<16x128xf32>
    %c0_9 = arith.constant 0 : index
    %c0_10 = arith.constant 0 : index
    %12 = vector.load %arg5[%c0_9, %c0_10] : memref<1x128xf32, #tpu.memory_space<vmem>>, vector<1x128xf32>
    %13 = vector.broadcast %12 : vector<1x128xf32> to vector<16x128xf32>
    %14 = arith.addf %11, %13 : vector<16x128xf32>
    %cst_11 = arith.constant 0.000000e+00 : f32
    %15 = vector.broadcast %cst_11 : f32 to vector<16x128xf32>
    %16 = arith.maximumf %14, %15 : vector<16x128xf32>
    %17 = arith.truncf %16 : vector<16x128xf32> to vector<16x128xbf16>
    %c0_12 = arith.constant 0 : index
    %c0_13 = arith.constant 0 : index
    %18 = vector.load %arg6[%c0_12, %c0_13] : memref<128x128xbf16, #tpu.memory_space<vmem>>, vector<128x128xbf16>
    %cst_14 = arith.constant dense<0.000000e+00> : vector<16x128xf32>
    %19 = tpu.matmul %17, %18, %cst_14 {dimension_numbers = #tpu.dot_dimension_numbers<[1], [0], [0], [1], [0, 0, 1, 1], [], []>} : vector<16x128xbf16>, vector<128x128xbf16>, vector<16x128xf32> -> vector<16x128xf32>
    %c0_15 = arith.constant 0 : index
    %c0_16 = arith.constant 0 : index
    %20 = vector.load %arg7[%c0_15, %c0_16] : memref<1x128xf32, #tpu.memory_space<vmem>>, vector<1x128xf32>
    %21 = vector.broadcast %20 : vector<1x128xf32> to vector<16x128xf32>
    %22 = arith.addf %19, %21 : vector<16x128xf32>
    %23 = arith.negf %22 : vector<16x128xf32>
    %24 = math.exp %23 : vector<16x128xf32>
    %cst_17 = arith.constant 1.000000e+00 : f32
    %25 = vector.broadcast %cst_17 : f32 to vector<16x128xf32>
    %26 = arith.addf %25, %24 : vector<16x128xf32>
    %27 = arith.divf %25, %26 : vector<16x128xf32>
    %c0_18 = arith.constant 0 : index
    %c0_19 = arith.constant 0 : index
    %28 = vector.load %arg8[%c0_18, %c0_19] : memref<16x128xf32, #tpu.memory_space<vmem>>, vector<16x128xf32>
    tpu.vector_store %arg8[%c0_18, %c0_19], %27 {strides = array<i32>} : memref<16x128xf32, #tpu.memory_space<vmem>>, vector<16x128xf32>,
    return
  }
  func.func @transform_0(%arg0: i32) -> (i32, i32) {
    %c0_i32 = arith.constant 0 : i32
    %c0_i32_0 = arith.constant 0 : i32
    return %arg0, %c0_i32 : i32, i32
  }
  func.func @transform_1(%arg0: i32) -> (i32, i32) {
    %c0_i32 = arith.constant 0 : i32
    %c0_i32_0 = arith.constant 0 : i32
    %c0_i32_1 = arith.constant 0 : i32
    return %c0_i32, %c0_i32_0 : i32, i32
  }
  func.func @transform_2(%arg0: i32) -> (i32, i32) {
    %c0_i32 = arith.constant 0 : i32
    %c0_i32_0 = arith.constant 0 : i32
    %c0_i32_1 = arith.constant 0 : i32
    return %c0_i32, %c0_i32_0 : i32, i32
  }
  func.func @transform_3(%arg0: i32) -> (i32, i32) {
    %c0_i32 = arith.constant 0 : i32
    %c0_i32_0 = arith.constant 0 : i32
    %c0_i32_1 = arith.constant 0 : i32
    return %c0_i32, %c0_i32_0 : i32, i32
  }
  func.func @transform_4(%arg0: i32) -> (i32, i32) {
    %c0_i32 = arith.constant 0 : i32
    %c0_i32_0 = arith.constant 0 : i32
    %c0_i32_1 = arith.constant 0 : i32
    return %c0_i32, %c0_i32_0 : i32, i32
  }
  func.func @transform_5(%arg0: i32) -> (i32, i32) {
    %c0_i32 = arith.constant 0 : i32
    %c0_i32_0 = arith.constant 0 : i32
    %c0_i32_1 = arith.constant 0 : i32
    return %c0_i32, %c0_i32_0 : i32, i32
  }
  func.func @transform_6(%arg0: i32) -> (i32, i32) {
    %c0_i32 = arith.constant 0 : i32
    %c0_i32_0 = arith.constant 0 : i32
    %c0_i32_1 = arith.constant 0 : i32
    return %c0_i32, %c0_i32_0 : i32, i32
  }
  func.func @transform_7(%arg0: i32) -> (i32, i32) {
    %c0_i32 = arith.constant 0 : i32
    %c0_i32_0 = arith.constant 0 : i32
    return %arg0, %c0_i32 : i32, i32
  }
}

</mosaic_0001>

<bundles_post_ra>
// kernel: tpu_custom_call.1
= control target key start
LH: loop header
LB: loop body
LE: loop exit
PB: predicated region body
PF: predicated region fallthrough
CT: control target
= control target key end

     0   :  { %12 = vsyncpa [#allocation3], 0  ;;  %s910_s0 = inlined_call_operand.hbm [shape: f32[16,128], index: 0, kind: input, shape index: {}]   ;;  %s911_s1 = inlined_call_operand.hbm [shape: bf16[128,128], index: 1, kind: input, shape index: {}]   ;;  %s912_s2 = inlined_call_operand.vmem [shape: f32[1,128], index: 2, kind: input, shape index: {}]   ;;  %s913_s3 = inlined_call_operand.hbm [shape: bf16[128,128], index: 3, kind: input, shape index: {}]   ;;  %s914_s4 = inlined_call_operand.vmem [shape: f32[1,128], index: 4, kind: input, shape index: {}]   ;;  %s915_s5 = inlined_call_operand.hbm [shape: bf16[128,128], index: 5, kind: input, shape index: {}]   ;;  %s916_s6 = inlined_call_operand.vmem [shape: f32[1,128], index: 6, kind: input, shape index: {}]   ;;  %s917_s7 = inlined_call_operand.hbm [shape: f32[16,128], index: 7, kind: output, shape index: {}]  }
   0x1   :  { %13 = vsyncpa [#allocation6], 0 }
   0x2   :  { %14 = vsyncpa [#allocation9], 0 }
   0x3   :  { %15 = vsyncpa [#allocation4], 0  ;;  %s738_s24 = smov [#allocation5]   ;;  %s620_s28 = scalar_lea.hbm %s911_s1, 1024 }
   0x4   :  { %s33_s25 = sshll.u32 %s738_s24, 4  ;;  %p621_p0 = scmp.ne.s32.totalorder %s911_s1, %s620_s28  ;;  %s34_s25 = int_to_ptr.vmem [resolvable:$true] %s33_s25 }
   0x5   :  { %p624_p1 = scmp.lt.u32.totalorder %s620_s28, %s911_s1 }
   0x7   :  { %p626_p2 = pnand %p624_p1, %p621_p0 }
   0x9   :  { %629 = shalt.err (!%p626_p2)
}
   0xa   :  { %s630_s10 = scalar_lea.vmem %s34_s25, 1024  ;;  %p635_p4 = scmp.lt.s32.totalorder %s34_s25, %s34_s25 }
   0xb   :  { %p631_p3 = scmp.ne.s32.totalorder %s34_s25, %s630_s10  ;;  %p636_p5 = scmp.lt.s32.totalorder %s630_s10, %s630_s10 }
   0xd   :  { %p637_p6 = por %p636_p5, %p635_p4 }
   0xf   :  { %p638_p7 = pnand %p637_p6, %p631_p3 }
  0x11   :  { %641 = shalt.err (!%p638_p7)
}
  0x12   :  { %s739_s11 = smov 64   ;;  %s740_s12 = smov 4  }
  0x13   :  { %39 = dma.hbm_to_vmem [thread:$0]  %s911_s1, 1024, %s34_s25, [#allocation6], %s739_s11, %s739_s11, %s740_s12  }
  0x14   :  { %s741_s15 = smov [#allocation2]   ;;  %s642_s19 = scalar_lea.hbm %s910_s0, 256 }
  0x15   :  { %s21_s16 = sshll.u32 %s741_s15, 4  ;;  %p643_p8 = scmp.ne.s32.totalorder %s910_s0, %s642_s19  ;;  %s22_s16 = int_to_ptr.vmem [resolvable:$true] %s21_s16 }
  0x16   :  { %p646_p9 = scmp.lt.u32.totalorder %s642_s19, %s910_s0 }
  0x18   :  { %p648_p10 = pnand %p646_p9, %p643_p8 }
  0x1a   :  { %651 = shalt.err (!%p648_p10)
}
  0x1b   :  { %s652_s24 = scalar_lea.vmem %s22_s16, 256  ;;  %p657_p12 = scmp.lt.s32.totalorder %s22_s16, %s22_s16 }
  0x1c   :  { %p653_p11 = scmp.ne.s32.totalorder %s22_s16, %s652_s24  ;;  %p658_p13 = scmp.lt.s32.totalorder %s652_s24, %s652_s24 }
  0x1e   :  { %p659_p0 = por %p658_p13, %p657_p12 }
  0x20   :  { %p660_p1 = pnand %p659_p0, %p653_p11 }
  0x22   :  { %663 = shalt.err (!%p660_p1)
}
  0x23   :  { %s742_s1 = smov 128   ;;  %s743_s25 = smov 8  }
  0x24   :  { %27 = dma.hbm_to_vmem [thread:$0]  %s910_s0, 256, %s22_s16, [#allocation3], %s742_s1, %s742_s1, %s743_s25  }
  0x25   :  { %s744_s28 = smov [#allocation7]   ;;  %s745_s30 = smov [#allocation8]  }
  0x26   :  { %s47_s29 = sshll.u32 %s744_s28, 4  ;;  %s61_s8 = sshll.u32 %s745_s30, 4  ;;  %s48_s29 = int_to_ptr.vmem [resolvable:$true] %s47_s29  ;;  %s819_s8 = int_to_ptr.vmem [resolvable:$true] %s61_s8 }
  0x27   :  { %s664_s13 = scalar_lea.hbm %s913_s3, 1024 }
  0x28   :  { %p665_p2 = scmp.ne.s32.totalorder %s913_s3, %s664_s13  ;;  %p668_p3 = scmp.lt.u32.totalorder %s664_s13, %s913_s3 }
  0x2a   :  { %p670_p4 = pnand %p668_p3, %p665_p2 }
  0x2c   :  { %673 = shalt.err (!%p670_p4)
}
  0x2d   :  { %s674_s0 = scalar_lea.vmem %s48_s29, 1024  ;;  %p679_p6 = scmp.lt.s32.totalorder %s48_s29, %s48_s29 }
  0x2e   :  { %p675_p5 = scmp.ne.s32.totalorder %s48_s29, %s674_s0  ;;  %p680_p7 = scmp.lt.s32.totalorder %s674_s0, %s674_s0 }
  0x30   :  { %p681_p8 = por %p680_p7, %p679_p6 }
  0x32   :  { %p682_p9 = pnand %p681_p8, %p675_p5 }
  0x34   :  { %685 = shalt.err (!%p682_p9)
}
  0x35   :  { %53 = dma.hbm_to_vmem [thread:$0]  %s913_s3, 1024, %s48_s29, [#allocation6], %s739_s11, %s739_s11, %s740_s12  }
  0x36   :  { %s686_s22 = scalar_lea.hbm %s915_s5, 1024 }
  0x37   :  { %p687_p10 = scmp.ne.s32.totalorder %s915_s5, %s686_s22  ;;  %p690_p11 = scmp.lt.u32.totalorder %s686_s22, %s915_s5 }
  0x39   :  { %p692_p12 = pnand %p690_p11, %p687_p10 }
  0x3b   :  { %695 = shalt.err (!%p692_p12)
}
  0x3c   :  { %s696_s28 = scalar_lea.vmem %s819_s8, 1024  ;;  %p701_p0 = scmp.lt.s32.totalorder %s819_s8, %s819_s8 }
  0x3d   :  { %p697_p13 = scmp.ne.s32.totalorder %s819_s8, %s696_s28  ;;  %p702_p1 = scmp.lt.s32.totalorder %s696_s28, %s696_s28 }
  0x3f   :  { %p703_p2 = por %p702_p1, %p701_p0 }
  0x41   :  { %p704_p3 = pnand %p703_p2, %p697_p13 }
  0x43   :  { %707 = shalt.err (!%p704_p3)
}
  0x44   :  { %67 = dma.hbm_to_vmem [thread:$0]  %s915_s5, 1024, %s819_s8, [#allocation9], %s739_s11, %s739_s11, %s740_s12  }
  0x45   :  { %730 = dma.done.wait [#allocation3], 256  }
  0x46   :  { %731 = vsyncadd [#allocation3], 4294967040 }
  0x47   :  { %732 = dma.done.wait [#allocation6], 2048  }
  0x48   :  { %733 = vsyncadd [#allocation6], 4294965248 }
  0x49   :  { %734 = dma.done.wait [#allocation9], 1024  }
  0x4a   :  { %735 = vsyncadd [#allocation9], 4294966272  ;;  %v746_v0 = vmov 0.0   ;;  %vm747_vm0 = vmmov 0   ;;  %v588_v1 = vld [vmem:[#allocation5] sm:$0xff]   ;;  %v589_v2 = vld [vmem:[#allocation5 + $0x8] sm:$0xff]  }
  0x4b   :  { %517 = vmatprep.subr.bf16.mxu0 %v746_v0  ;;  %533 = vmatprep.mubr.msk.bf16.mxu0 %vm747_vm0, %v746_v0  ;;  %v590_v3 = vld [vmem:[#allocation5 + $0x10] sm:$0xff]   ;;  %v596_v4 = vld [vmem:[#allocation7] sm:$0xff]   ;;  %v591_v5 = vld [vmem:[#allocation5 + $0x18] sm:$0xff]  }
  0x4c   :  { %537 = vmatprep.subr.bf16.mxu1 %v746_v0  ;;  %553 = vmatprep.mubr.msk.bf16.mxu1 %vm747_vm0, %v746_v0  ;;  %v597_v6 = vld [vmem:[#allocation7 + $0x8] sm:$0xff]   ;;  %v592_v7 = vld [vmem:[#allocation5 + $0x20] sm:$0xff]   ;;  %v598_v8 = vld [vmem:[#allocation7 + $0x10] sm:$0xff]  }
  0x4d   :  { %518 = vmatpush3.bf16.msra.mxu0 %v588_v1  ;;  %538 = vmatpush3.bf16.msra.mxu1 %v596_v4  ;;  %v593_v9 = vld [vmem:[#allocation5 + $0x28] sm:$0xff]   ;;  %v599_v10 = vld [vmem:[#allocation7 + $0x18] sm:$0xff]   ;;  %v594_v11 = vld [vmem:[#allocation5 + $0x30] sm:$0xff]  }
  0x4e   :  { %519 = vmatprep.subr.bf16.mxu0 %v746_v0  ;;  %539 = vmatprep.subr.bf16.mxu1 %v746_v0  ;;  %v600_v12 = vld [vmem:[#allocation7 + $0x20] sm:$0xff]   ;;  %v595_v13 = vld [vmem:[#allocation5 + $0x38] sm:$0xff]   ;;  %v83_v14 = vld [vmem:[#allocation2] sm:$0xff] }
  0x4f   :  { %v84_v15 = vld [vmem:[#allocation2 + $0x8] sm:$0xff]  ;;  %v601_v16 = vld [vmem:[#allocation7 + $0x28] sm:$0xff]   ;;  %v602_v18 = vld [vmem:[#allocation7 + $0x30] sm:$0xff]  }
  0x50   :  { %v85_v17 = vpack.c.bf16 %v84_v15, %v83_v14  ;;  %v603_v19 = vld [vmem:[#allocation7 + $0x38] sm:$0xff]   ;;  %v604_v20 = vld [vmem:[#allocation8] sm:$0xff]   ;;  %v605_v21 = vld [vmem:[#allocation8 + $0x8] sm:$0xff]  }
  0x51   :  { %520 = vmatpush3.bf16.msra.mxu0 %v589_v2  ;;  %540 = vmatpush3.bf16.msra.mxu1 %v597_v6  ;;  %v606_v22 = vld [vmem:[#allocation8 + $0x10] sm:$0xff]   ;;  %v607_v23 = vld [vmem:[#allocation8 + $0x18] sm:$0xff]   ;;  %v608_v24 = vld [vmem:[#allocation8 + $0x20] sm:$0xff]  }
  0x52   :  { %521 = vmatprep.subr.bf16.mxu0 %v746_v0  ;;  %541 = vmatprep.subr.bf16.mxu1 %v746_v0  ;;  %v609_v25 = vld [vmem:[#allocation8 + $0x28] sm:$0xff]   ;;  %v461_v26 = vld [vmem:[%s912_s2] ss:$0 sm:$0xff]  ;;  %v611_v37 = vld [vmem:[#allocation8 + $0x38] sm:$0xff]  }
  0x53   :  { %v610_v36 = vld [vmem:[#allocation8 + $0x30] sm:$0xff]  }
  0x54   :  { %v470_v38 = vld [vmem:[%s914_s4] ss:$0 sm:$0xff]  ;;  %s748_s4 = smov [#allocation10]  }
  0x55   :  { %522 = vmatpush3.bf16.msra.mxu0 %v590_v3  ;;  %542 = vmatpush3.bf16.msra.mxu1 %v598_v8  ;;  %v479_v48 = vld [vmem:[%s916_s6] ss:$0 sm:$0xff]  ;;  %s447_s9 = sshll.u32 %s748_s4, 4  ;;  %s448_s9 = int_to_ptr.vmem [resolvable:$true] %s447_s9 }
  0x56   :  { %523 = vmatprep.subr.bf16.mxu0 %v746_v0  ;;  %543 = vmatprep.subr.bf16.mxu1 %v746_v0  ;;  %s708_s6 = scalar_lea.vmem %s448_s9, 256  ;;  %p713_p5 = scmp.lt.s32.totalorder %s448_s9, %s448_s9 }
  0x57   :  { %p709_p4 = scmp.ne.s32.totalorder %s448_s9, %s708_s6  ;;  %p714_p6 = scmp.lt.s32.totalorder %s708_s6, %s708_s6 }
  0x59   :  { %524 = vmatpush3.bf16.msra.mxu0 %v591_v5  ;;  %544 = vmatpush3.bf16.msra.mxu1 %v599_v10  ;;  %p715_p7 = por %p714_p6, %p713_p5 }
  0x5a   :  { %525 = vmatprep.subr.bf16.mxu0 %v746_v0  ;;  %545 = vmatprep.subr.bf16.mxu1 %v746_v0 }
  0x5b   :  { %p716_p8 = pnand %p715_p7, %p709_p4 }
  0x5d   :  { %526 = vmatpush3.bf16.msra.mxu0 %v592_v7  ;;  %546 = vmatpush3.bf16.msra.mxu1 %v600_v12 }
  0x5e   :  { %527 = vmatprep.subr.bf16.mxu0 %v746_v0  ;;  %547 = vmatprep.subr.bf16.mxu1 %v746_v0 }
  0x61   :  { %528 = vmatpush3.bf16.msra.mxu0 %v593_v9  ;;  %548 = vmatpush3.bf16.msra.mxu1 %v601_v16 }
  0x62   :  { %529 = vmatprep.subr.bf16.mxu0 %v746_v0  ;;  %549 = vmatprep.subr.bf16.mxu1 %v746_v0 }
  0x65   :  { %530 = vmatpush3.bf16.msra.mxu0 %v594_v11  ;;  %550 = vmatpush3.bf16.msra.mxu1 %v602_v18 }
  0x66   :  { %531 = vmatprep.subr.bf16.mxu0 %v746_v0  ;;  %551 = vmatprep.subr.bf16.mxu1 %v746_v0 }
  0x69   :  { %532 = vmatpush3.bf16.msra.mxu0 %v595_v13  ;;  %552 = vmatpush3.bf16.msra.mxu1 %v603_v19 }
  0x6a   :  { %557 = vmatprep.subr.bf16.mxu0 %v746_v0 }
  0x6c   :  { %534 = vmatmul.mubr.bf16.vlgmr.msra.gmra.mrb[0].mxu0 %v85_v17 }
  0x6d   :  { %573 = vmatprep.mubr.msk.bf16.mxu0 %vm747_vm0, %v746_v0  ;;  %558 = vmatpush3.bf16.msra.mxu0 %v604_v20 }
  0x6e   :  { %559 = vmatprep.subr.bf16.mxu0 %v746_v0 }
  0x71   :  { %560 = vmatpush3.bf16.msra.mxu0 %v605_v21 }
  0x72   :  { %561 = vmatprep.subr.bf16.mxu0 %v746_v0 }
  0x75   :  { %562 = vmatpush3.bf16.msra.mxu0 %v606_v22 }
  0x76   :  { %563 = vmatprep.subr.bf16.mxu0 %v746_v0 }
  0x79   :  { %564 = vmatpush3.bf16.msra.mxu0 %v607_v23 }
  0x7a   :  { %565 = vmatprep.subr.bf16.mxu0 %v746_v0 }
  0x7d   :  { %566 = vmatpush3.bf16.msra.mxu0 %v608_v24 }
  0x7e   :  { %567 = vmatprep.subr.bf16.mxu0 %v746_v0 }
  0x81   :  { %568 = vmatpush3.bf16.msra.mxu0 %v609_v25 }
  0x82   :  { %569 = vmatprep.subr.bf16.mxu0 %v746_v0 }
  0x85   :  { %570 = vmatpush3.bf16.msra.mxu0 %v610_v36 }
  0x86   :  { %571 = vmatprep.subr.bf16.mxu0 %v746_v0 }
  0x89   :  { %572 = vmatpush3.bf16.msra.mxu0 %v611_v37 }
 0x13f   :  { %v191_v27 = vpop.f32.mrb[0].mxu0 }
 0x140   :  { %v192_v28 = vadd.f32 %v461_v26, %v191_v27  ;;  %v535_v29 = vpop.f32.mrb[1].mxu0 }
 0x141   :  { %v194_v30 = vpop.f32.mrb[2].mxu0 }
 0x142   :  { %v195_v31 = vadd.f32 %v461_v26, %v194_v30  ;;  %v536_v32 = vpop.f32.mrb[3].mxu0  ;;  %v198_v33 = vmax.f32 %v192_v28, 0.0 }
 0x144   :  { %v199_v34 = vmax.f32 %v195_v31, 0.0 }
 0x146   :  { %v200_v35 = vpack.c.bf16 %v199_v34, %v198_v33 }
 0x148   :  { %554 = vmatmul.mubr.bf16.vlgmr.msra.gmra.mrb[0].mxu1 %v200_v35 }
 0x21b   :  { %v306_v39 = vpop.f32.mrb[0].mxu1 }
 0x21c   :  { %v307_v40 = vadd.f32 %v470_v38, %v306_v39  ;;  %v555_v41 = vpop.f32.mrb[1].mxu1 }
 0x21d   :  { %v309_v42 = vpop.f32.mrb[2].mxu1 }
 0x21e   :  { %v310_v43 = vadd.f32 %v470_v38, %v309_v42  ;;  %v556_v44 = vpop.f32.mrb[3].mxu1  ;;  %v313_v45 = vmax.f32 %v307_v40, 0.0 }
 0x220   :  { %v314_v46 = vmax.f32 %v310_v43, 0.0 }
 0x222   :  { %v315_v47 = vpack.c.bf16 %v314_v46, %v313_v45 }
 0x224   :  { %574 = vmatmul.mubr.bf16.vlgmr.msra.gmra.mrb[4].mxu0 %v315_v47 }
 0x2f7   :  { %v421_v49 = vpop.f32.mrb[4].mxu0 }
 0x2f8   :  { %v422_v50 = vadd.f32 %v479_v48, %v421_v49  ;;  %v575_v51 = vpop.f32.mrb[5].mxu0 }
 0x2f9   :  { %v424_v52 = vpop.f32.mrb[6].mxu0 }
 0x2fa   :  { %v488_v53 = vmul.f32 -1.442695, %v422_v50  ;;  %v425_v54 = vadd.f32 %v479_v48, %v424_v52  ;;  %v576_v55 = vpop.f32.mrb[7].mxu0 }
 0x2fc   :  { %612 = vpow2.f32 %v488_v53  ;;  %v489_v56 = vmul.f32 -1.442695, %v425_v54 }
 0x2fe   :  { %614 = vpow2.f32 %v489_v56 }
 0x306   :  { %v613_v57 = vpop.eup %612 }
 0x307   :  { %v434_v58 = vadd.f32 1.0, %v613_v57 }
 0x308   :  { %v615_v59 = vpop.eup %614 }
 0x309   :  { %616 = vrcp.f32 %v434_v58  ;;  %v435_v60 = vadd.f32 1.0, %v615_v59 }
 0x30b   :  { %618 = vrcp.f32 %v435_v60 }
 0x313   :  { %v617_v61 = vpop.eup %616 }
 0x314   :  { %440 = vst [vmem:[#allocation10] sm:$0xff] %v617_v61 }
 0x315   :  { %v619_v62 = vpop.eup %618 }
 0x316   :  { %441 = vst [vmem:[#allocation10 + $0x8] sm:$0xff] %v619_v62 }
 0x317   :  { %719 = shalt.err (!%p716_p8)
}
 0x318   :  { %s720_s14 = scalar_lea.hbm %s917_s7, 256 }
 0x319   :  { %p721_p9 = scmp.ne.s32.totalorder %s917_s7, %s720_s14  ;;  %p724_p10 = scmp.lt.u32.totalorder %s720_s14, %s917_s7 }
 0x31b   :  { %p726_p11 = pnand %p724_p10, %p721_p9 }
 0x31d   :  { %729 = shalt.err (!%p726_p11)
}
 0x31e   :  { %453 = dma.vmem_to_hbm [thread:$0]  %s448_s9, 256, %s917_s7, [#allocation4], %s742_s1, %s742_s1, %s743_s25  }
 0x31f   :  { %736 = dma.done.wait [#allocation4], 256  }
 0x320   :  { %737 = vsyncadd [#allocation4], 4294967040 }
 0x321   :  { %457 = vsyncpa [#allocation3], 1 }
 0x322   :  { %458 = vsyncpa [#allocation6], 1 }
 0x323   :  { %459 = vsyncpa [#allocation9], 1 }
 0x324   :  { %460 = vsyncpa [#allocation4], 1 }

// kernel: tpu_custom_call.1
= control target key start
LH: loop header
LB: loop body
LE: loop exit
PB: predicated region body
PF: predicated region fallthrough
CT: control target
= control target key end

     0   :  { %12 = vsyncpa [#allocation3], 0  ;;  %s910_s0 = inlined_call_operand.hbm [shape: f32[16,128], index: 0, kind: input, shape index: {}]   ;;  %s911_s1 = inlined_call_operand.hbm [shape: bf16[128,128], index: 1, kind: input, shape index: {}]   ;;  %s912_s2 = inlined_call_operand.vmem [shape: f32[1,128], index: 2, kind: input, shape index: {}]   ;;  %s913_s3 = inlined_call_operand.hbm [shape: bf16[128,128], index: 3, kind: input, shape index: {}]   ;;  %s914_s4 = inlined_call_operand.vmem [shape: f32[1,128], index: 4, kind: input, shape index: {}]   ;;  %s915_s5 = inlined_call_operand.hbm [shape: bf16[128,128], index: 5, kind: input, shape index: {}]   ;;  %s916_s6 = inlined_call_operand.vmem [shape: f32[1,128], index: 6, kind: input, shape index: {}]   ;;  %s917_s7 = inlined_call_operand.hbm [shape: f32[16,128], index: 7, kind: output, shape index: {}]  }
   0x1   :  { %13 = vsyncpa [#allocation6], 0 }
   0x2   :  { %14 = vsyncpa [#allocation9], 0 }
   0x3   :  { %15 = vsyncpa [#allocation4], 0  ;;  %s738_s24 = smov [#allocation5]   ;;  %s620_s28 = scalar_lea.hbm %s911_s1, 1024 }
   0x4   :  { %s33_s25 = sshll.u32 %s738_s24, 4  ;;  %p621_p0 = scmp.ne.s32.totalorder %s911_s1, %s620_s28  ;;  %s34_s25 = int_to_ptr.vmem [resolvable:$true] %s33_s25 }
   0x5   :  { %p624_p1 = scmp.lt.u32.totalorder %s620_s28, %s911_s1 }
   0x7   :  { %p626_p2 = pnand %p624_p1, %p621_p0 }
   0x9   :  { %629 = shalt.err (!%p626_p2)
}
   0xa   :  { %s630_s10 = scalar_lea.vmem %s34_s25, 1024  ;;  %p635_p4 = scmp.lt.s32.totalorder %s34_s25, %s34_s25 }
   0xb   :  { %p631_p3 = scmp.ne.s32.totalorder %s34_s25, %s630_s10  ;;  %p636_p5 = scmp.lt.s32.totalorder %s630_s10, %s630_s10 }
   0xd   :  { %p637_p6 = por %p636_p5, %p635_p4 }
   0xf   :  { %p638_p7 = pnand %p637_p6, %p631_p3 }
  0x11   :  { %641 = shalt.err (!%p638_p7)
}
  0x12   :  { %s739_s11 = smov 64   ;;  %s740_s12 = smov 4  }
  0x13   :  { %39 = dma.hbm_to_vmem [thread:$0]  %s911_s1, 1024, %s34_s25, [#allocation6], %s739_s11, %s739_s11, %s740_s12  }
  0x14   :  { %s741_s15 = smov [#allocation2]   ;;  %s642_s19 = scalar_lea.hbm %s910_s0, 256 }
  0x15   :  { %s21_s16 = sshll.u32 %s741_s15, 4  ;;  %p643_p8 = scmp.ne.s32.totalorder %s910_s0, %s642_s19  ;;  %s22_s16 = int_to_ptr.vmem [resolvable:$true] %s21_s16 }
  0x16   :  { %p646_p9 = scmp.lt.u32.totalorder %s642_s19, %s910_s0 }
  0x18   :  { %p648_p10 = pnand %p646_p9, %p643_p8 }
  0x1a   :  { %651 = shalt.err (!%p648_p10)
}
  0x1b   :  { %s652_s24 = scalar_lea.vmem %s22_s16, 256  ;;  %p657_p12 = scmp.lt.s32.totalorder %s22_s16, %s22_s16 }
  0x1c   :  { %p653_p11 = scmp.ne.s32.totalorder %s22_s16, %s652_s24  ;;  %p658_p13 = scmp.lt.s32.totalorder %s652_s24, %s652_s24 }
  0x1e   :  { %p659_p0 = por %p658_p13, %p657_p12 }
  0x20   :  { %p660_p1 = pnand %p659_p0, %p653_p11 }
  0x22   :  { %663 = shalt.err (!%p660_p1)
}
  0x23   :  { %s742_s1 = smov 128   ;;  %s743_s25 = smov 8  }
  0x24   :  { %27 = dma.hbm_to_vmem [thread:$0]  %s910_s0, 256, %s22_s16, [#allocation3], %s742_s1, %s742_s1, %s743_s25  }
  0x25   :  { %s744_s28 = smov [#allocation7]   ;;  %s745_s30 = smov [#allocation8]  }
  0x26   :  { %s47_s29 = sshll.u32 %s744_s28, 4  ;;  %s61_s8 = sshll.u32 %s745_s30, 4  ;;  %s48_s29 = int_to_ptr.vmem [resolvable:$true] %s47_s29  ;;  %s819_s8 = int_to_ptr.vmem [resolvable:$true] %s61_s8 }
  0x27   :  { %s664_s13 = scalar_lea.hbm %s913_s3, 1024 }
  0x28   :  { %p665_p2 = scmp.ne.s32.totalorder %s913_s3, %s664_s13  ;;  %p668_p3 = scmp.lt.u32.totalorder %s664_s13, %s913_s3 }
  0x2a   :  { %p670_p4 = pnand %p668_p3, %p665_p2 }
  0x2c   :  { %673 = shalt.err (!%p670_p4)
}
  0x2d   :  { %s674_s0 = scalar_lea.vmem %s48_s29, 1024  ;;  %p679_p6 = scmp.lt.s32.totalorder %s48_s29, %s48_s29 }
  0x2e   :  { %p675_p5 = scmp.ne.s32.totalorder %s48_s29, %s674_s0  ;;  %p680_p7 = scmp.lt.s32.totalorder %s674_s0, %s674_s0 }
  0x30   :  { %p681_p8 = por %p680_p7, %p679_p6 }
  0x32   :  { %p682_p9 = pnand %p681_p8, %p675_p5 }
  0x34   :  { %685 = shalt.err (!%p682_p9)
}
  0x35   :  { %53 = dma.hbm_to_vmem [thread:$0]  %s913_s3, 1024, %s48_s29, [#allocation6], %s739_s11, %s739_s11, %s740_s12  }
  0x36   :  { %s686_s22 = scalar_lea.hbm %s915_s5, 1024 }
  0x37   :  { %p687_p10 = scmp.ne.s32.totalorder %s915_s5, %s686_s22  ;;  %p690_p11 = scmp.lt.u32.totalorder %s686_s22, %s915_s5 }
  0x39   :  { %p692_p12 = pnand %p690_p11, %p687_p10 }
  0x3b   :  { %695 = shalt.err (!%p692_p12)
}
  0x3c   :  { %s696_s28 = scalar_lea.vmem %s819_s8, 1024  ;;  %p701_p0 = scmp.lt.s32.totalorder %s819_s8, %s819_s8 }
  0x3d   :  { %p697_p13 = scmp.ne.s32.totalorder %s819_s8, %s696_s28  ;;  %p702_p1 = scmp.lt.s32.totalorder %s696_s28, %s696_s28 }
  0x3f   :  { %p703_p2 = por %p702_p1, %p701_p0 }
  0x41   :  { %p704_p3 = pnand %p703_p2, %p697_p13 }
  0x43   :  { %707 = shalt.err (!%p704_p3)
}
  0x44   :  { %67 = dma.hbm_to_vmem [thread:$0]  %s915_s5, 1024, %s819_s8, [#allocation9], %s739_s11, %s739_s11, %s740_s12  }
  0x45   :  { %730 = dma.done.wait [#allocation3], 256  }
  0x46   :  { %731 = vsyncadd [#allocation3], 4294967040 }
  0x47   :  { %732 = dma.done.wait [#allocation6], 2048  }
  0x48   :  { %733 = vsyncadd [#allocation6], 4294965248 }
  0x49   :  { %734 = dma.done.wait [#allocation9], 1024  }
  0x4a   :  { %735 = vsyncadd [#allocation9], 4294966272  ;;  %v746_v0 = vmov 0.0   ;;  %vm747_vm0 = vmmov 0   ;;  %v588_v1 = vld [vmem:[#allocation5] sm:$0xff]   ;;  %v589_v2 = vld [vmem:[#allocation5 + $0x8] sm:$0xff]  }
  0x4b   :  { %517 = vmatprep.subr.bf16.mxu0 %v746_v0  ;;  %533 = vmatprep.mubr.msk.bf16.mxu0 %vm747_vm0, %v746_v0  ;;  %v590_v3 = vld [vmem:[#allocation5 + $0x10] sm:$0xff]   ;;  %v596_v4 = vld [vmem:[#allocation7] sm:$0xff]   ;;  %v591_v5 = vld [vmem:[#allocation5 + $0x18] sm:$0xff]  }
  0x4c   :  { %537 = vmatprep.subr.bf16.mxu1 %v746_v0  ;;  %553 = vmatprep.mubr.msk.bf16.mxu1 %vm747_vm0, %v746_v0  ;;  %v597_v6 = vld [vmem:[#allocation7 + $0x8] sm:$0xff]   ;;  %v592_v7 = vld [vmem:[#allocation5 + $0x20] sm:$0xff]   ;;  %v598_v8 = vld [vmem:[#allocation7 + $0x10] sm:$0xff]  }
  0x4d   :  { %518 = vmatpush3.bf16.msra.mxu0 %v588_v1  ;;  %538 = vmatpush3.bf16.msra.mxu1 %v596_v4  ;;  %v593_v9 = vld [vmem:[#allocation5 + $0x28] sm:$0xff]   ;;  %v599_v10 = vld [vmem:[#allocation7 + $0x18] sm:$0xff]   ;;  %v594_v11 = vld [vmem:[#allocation5 + $0x30] sm:$0xff]  }
  0x4e   :  { %519 = vmatprep.subr.bf16.mxu0 %v746_v0  ;;  %539 = vmatprep.subr.bf16.mxu1 %v746_v0  ;;  %v600_v12 = vld [vmem:[#allocation7 + $0x20] sm:$0xff]   ;;  %v595_v13 = vld [vmem:[#allocation5 + $0x38] sm:$0xff]   ;;  %v83_v14 = vld [vmem:[#allocation2] sm:$0xff] }
  0x4f   :  { %v84_v15 = vld [vmem:[#allocation2 + $0x8] sm:$0xff]  ;;  %v601_v16 = vld [vmem:[#allocation7 + $0x28] sm:$0xff]   ;;  %v602_v18 = vld [vmem:[#allocation7 + $0x30] sm:$0xff]  }
  0x50   :  { %v85_v17 = vpack.c.bf16 %v84_v15, %v83_v14  ;;  %v603_v19 = vld [vmem:[#allocation7 + $0x38] sm:$0xff]   ;;  %v604_v20 = vld [vmem:[#allocation8] sm:$0xff]   ;;  %v605_v21 = vld [vmem:[#allocation8 + $0x8] sm:$0xff]  }
  0x51   :  { %520 = vmatpush3.bf16.msra.mxu0 %v589_v2  ;;  %540 = vmatpush3.bf16.msra.mxu1 %v597_v6  ;;  %v606_v22 = vld [vmem:[#allocation8 + $0x10] sm:$0xff]   ;;  %v607_v23 = vld [vmem:[#allocation8 + $0x18] sm:$0xff]   ;;  %v608_v24 = vld [vmem:[#allocation8 + $0x20] sm:$0xff]  }
  0x52   :  { %521 = vmatprep.subr.bf16.mxu0 %v746_v0  ;;  %541 = vmatprep.subr.bf16.mxu1 %v746_v0  ;;  %v609_v25 = vld [vmem:[#allocation8 + $0x28] sm:$0xff]   ;;  %v461_v26 = vld [vmem:[%s912_s2] ss:$0 sm:$0xff]  ;;  %v611_v37 = vld [vmem:[#allocation8 + $0x38] sm:$0xff]  }
  0x53   :  { %v610_v36 = vld [vmem:[#allocation8 + $0x30] sm:$0xff]  }
  0x54   :  { %v470_v38 = vld [vmem:[%s914_s4] ss:$0 sm:$0xff]  ;;  %s748_s4 = smov [#allocation10]  }
  0x55   :  { %522 = vmatpush3.bf16.msra.mxu0 %v590_v3  ;;  %542 = vmatpush3.bf16.msra.mxu1 %v598_v8  ;;  %v479_v48 = vld [vmem:[%s916_s6] ss:$0 sm:$0xff]  ;;  %s447_s9 = sshll.u32 %s748_s4, 4  ;;  %s448_s9 = int_to_ptr.vmem [resolvable:$true] %s447_s9 }
  0x56   :  { %523 = vmatprep.subr.bf16.mxu0 %v746_v0  ;;  %543 = vmatprep.subr.bf16.mxu1 %v746_v0  ;;  %s708_s6 = scalar_lea.vmem %s448_s9, 256  ;;  %p713_p5 = scmp.lt.s32.totalorder %s448_s9, %s448_s9 }
  0x57   :  { %p709_p4 = scmp.ne.s32.totalorder %s448_s9, %s708_s6  ;;  %p714_p6 = scmp.lt.s32.totalorder %s708_s6, %s708_s6 }
  0x59   :  { %524 = vmatpush3.bf16.msra.mxu0 %v591_v5  ;;  %544 = vmatpush3.bf16.msra.mxu1 %v599_v10  ;;  %p715_p7 = por %p714_p6, %p713_p5 }
  0x5a   :  { %525 = vmatprep.subr.bf16.mxu0 %v746_v0  ;;  %545 = vmatprep.subr.bf16.mxu1 %v746_v0 }
  0x5b   :  { %p716_p8 = pnand %p715_p7, %p709_p4 }
  0x5d   :  { %526 = vmatpush3.bf16.msra.mxu0 %v592_v7  ;;  %546 = vmatpush3.bf16.msra.mxu1 %v600_v12 }
  0x5e   :  { %527 = vmatprep.subr.bf16.mxu0 %v746_v0  ;;  %547 = vmatprep.subr.bf16.mxu1 %v746_v0 }
  0x61   :  { %528 = vmatpush3.bf16.msra.mxu0 %v593_v9  ;;  %548 = vmatpush3.bf16.msra.mxu1 %v601_v16 }
  0x62   :  { %529 = vmatprep.subr.bf16.mxu0 %v746_v0  ;;  %549 = vmatprep.subr.bf16.mxu1 %v746_v0 }
  0x65   :  { %530 = vmatpush3.bf16.msra.mxu0 %v594_v11  ;;  %550 = vmatpush3.bf16.msra.mxu1 %v602_v18 }
  0x66   :  { %531 = vmatprep.subr.bf16.mxu0 %v746_v0  ;;  %551 = vmatprep.subr.bf16.mxu1 %v746_v0 }
  0x69   :  { %532 = vmatpush3.bf16.msra.mxu0 %v595_v13  ;;  %552 = vmatpush3.bf16.msra.mxu1 %v603_v19 }
  0x6a   :  { %557 = vmatprep.subr.bf16.mxu0 %v746_v0 }
  0x6c   :  { %534 = vmatmul.mubr.bf16.vlgmr.msra.gmra.mrb[0].mxu0 %v85_v17 }
  0x6d   :  { %573 = vmatprep.mubr.msk.bf16.mxu0 %vm747_vm0, %v746_v0  ;;  %558 = vmatpush3.bf16.msra.mxu0 %v604_v20 }
  0x6e   :  { %559 = vmatprep.subr.bf16.mxu0 %v746_v0 }
  0x71   :  { %560 = vmatpush3.bf16.msra.mxu0 %v605_v21 }
  0x72   :  { %561 = vmatprep.subr.bf16.mxu0 %v746_v0 }
  0x75   :  { %562 = vmatpush3.bf16.msra.mxu0 %v606_v22 }
  0x76   :  { %563 = vmatprep.subr.bf16.mxu0 %v746_v0 }
  0x79   :  { %564 = vmatpush3.bf16.msra.mxu0 %v607_v23 }
  0x7a   :  { %565 = vmatprep.subr.bf16.mxu0 %v746_v0 }
  0x7d   :  { %566 = vmatpush3.bf16.msra.mxu0 %v608_v24 }
  0x7e   :  { %567 = vmatprep.subr.bf16.mxu0 %v746_v0 }
  0x81   :  { %568 = vmatpush3.bf16.msra.mxu0 %v609_v25 }
  0x82   :  { %569 = vmatprep.subr.bf16.mxu0 %v746_v0 }
  0x85   :  { %570 = vmatpush3.bf16.msra.mxu0 %v610_v36 }
  0x86   :  { %571 = vmatprep.subr.bf16.mxu0 %v746_v0 }
  0x89   :  { %572 = vmatpush3.bf16.msra.mxu0 %v611_v37 }
 0x13f   :  { %v191_v27 = vpop.f32.mrb[0].mxu0 }
 0x140   :  { %v192_v28 = vadd.f32 %v461_v26, %v191_v27  ;;  %v535_v29 = vpop.f32.mrb[1].mxu0 }
 0x141   :  { %v194_v30 = vpop.f32.mrb[2].mxu0 }
 0x142   :  { %v195_v31 = vadd.f32 %v461_v26, %v194_v30  ;;  %v536_v32 = vpop.f32.mrb[3].mxu0  ;;  %v198_v33 = vmax.f32 %v192_v28, 0.0 }
 0x144   :  { %v199_v34 = vmax.f32 %v195_v31, 0.0 }
 0x146   :  { %v200_v35 = vpack.c.bf16 %v199_v34, %v198_v33 }
 0x148   :  { %554 = vmatmul.mubr.bf16.vlgmr.msra.gmra.mrb[0].mxu1 %v200_v35 }
 0x21b   :  { %v306_v39 = vpop.f32.mrb[0].mxu1 }
 0x21c   :  { %v307_v40 = vadd.f32 %v470_v38, %v306_v39  ;;  %v555_v41 = vpop.f32.mrb[1].mxu1 }
 0x21d   :  { %v309_v42 = vpop.f32.mrb[2].mxu1 }
 0x21e   :  { %v310_v43 = vadd.f32 %v470_v38, %v309_v42  ;;  %v556_v44 = vpop.f32.mrb[3].mxu1  ;;  %v313_v45 = vmax.f32 %v307_v40, 0.0 }
 0x220   :  { %v314_v46 = vmax.f32 %v310_v43, 0.0 }
 0x222   :  { %v315_v47 = vpack.c.bf16 %v314_v46, %v313_v45 }
 0x224   :  { %574 = vmatmul.mubr.bf16.vlgmr.msra.gmra.mrb[4].mxu0 %v315_v47 }
 0x2f7   :  { %v421_v49 = vpop.f32.mrb[4].mxu0 }
 0x2f8   :  { %v422_v50 = vadd.f32 %v479_v48, %v421_v49  ;;  %v575_v51 = vpop.f32.mrb[5].mxu0 }
 0x2f9   :  { %v424_v52 = vpop.f32.mrb[6].mxu0 }
 0x2fa   :  { %v488_v53 = vmul.f32 -1.442695, %v422_v50  ;;  %v425_v54 = vadd.f32 %v479_v48, %v424_v52  ;;  %v576_v55 = vpop.f32.mrb[7].mxu0 }
 0x2fc   :  { %612 = vpow2.f32 %v488_v53  ;;  %v489_v56 = vmul.f32 -1.442695, %v425_v54 }
 0x2fe   :  { %614 = vpow2.f32 %v489_v56 }
 0x306   :  { %v613_v57 = vpop.eup %612 }
 0x307   :  { %v434_v58 = vadd.f32 1.0, %v613_v57 }
 0x308   :  { %v615_v59 = vpop.eup %614 }
 0x309   :  { %616 = vrcp.f32 %v434_v58  ;;  %v435_v60 = vadd.f32 1.0, %v615_v59 }
 0x30b   :  { %618 = vrcp.f32 %v435_v60 }
 0x313   :  { %v617_v61 = vpop.eup %616 }
 0x314   :  { %440 = vst [vmem:[#allocation10] sm:$0xff] %v617_v61 }
 0x315   :  { %v619_v62 = vpop.eup %618 }
 0x316   :  { %441 = vst [vmem:[#allocation10 + $0x8] sm:$0xff] %v619_v62 }
 0x317   :  { %719 = shalt.err (!%p716_p8)
}
 0x318   :  { %s720_s14 = scalar_lea.hbm %s917_s7, 256 }
 0x319   :  { %p721_p9 = scmp.ne.s32.totalorder %s917_s7, %s720_s14  ;;  %p724_p10 = scmp.lt.u32.totalorder %s720_s14, %s917_s7 }
 0x31b   :  { %p726_p11 = pnand %p724_p10, %p721_p9 }
 0x31d   :  { %729 = shalt.err (!%p726_p11)
}
 0x31e   :  { %453 = dma.vmem_to_hbm [thread:$0]  %s448_s9, 256, %s917_s7, [#allocation4], %s742_s1, %s742_s1, %s743_s25  }
 0x31f   :  { %736 = dma.done.wait [#allocation4], 256  }
 0x320   :  { %737 = vsyncadd [#allocation4], 4294967040 }
 0x321   :  { %457 = vsyncpa [#allocation3], 1 }
 0x322   :  { %458 = vsyncpa [#allocation6], 1 }
 0x323   :  { %459 = vsyncpa [#allocation9], 1 }
 0x324   :  { %460 = vsyncpa [#allocation4], 1 }

</bundles_post_ra>
